<compile_context>
chip_gen: v6e
topology: v6e:2x2x1
jax: 0.10.0
libtpu: 0.0.40
codegen_flags: <defaults>
</compile_context>

<pallas_src>
import math

import jax
import jax.numpy as jnp
from jax.experimental import pallas as pl
from jax.experimental.pallas import tpu as pltpu

_TWO_PI = 2.0 * math.pi


def _round_up(v, m):
    return ((v + m - 1) // m) * m


def _gfp_kernel(x_ref, w_ref, out_ref):
    # x_ref: (TILE_N, 1), w_ref: (1, H_pad), out_ref: (TILE_N, 2*H_pad)
    h = w_ref.shape[1]
    w = w_ref[...] * _TWO_PI            # (1, H_pad): one-vreg-row rescale
    proj = x_ref[...] * w               # (TILE_N, H_pad) broadcast, VPU
    out_ref[:, :h] = jnp.sin(proj).astype(out_ref.dtype)   # lane-aligned halves
    out_ref[:, h:] = jnp.cos(proj).astype(out_ref.dtype)


def gaussian_fourier_projection(x, W, *, tile_n=512, out_dtype=jnp.float32):
    """x: (N,) float, W: (H,) float -> (N, 2H) out_dtype.

    Matches torch.cat([sin(x W 2pi), cos(x W 2pi)], dim=-1).
    """
    n = x.shape[0]
    h = W.shape[0]

    # Lane-aligned feature width, sublane-aligned row tile.
    h_pad = _round_up(h, 128)
    tile_n = _round_up(max(8, min(tile_n, _round_up(n, 8))), 8)
    n_pad = _round_up(n, tile_n)

    x2d = jnp.zeros((n_pad, 1), jnp.float32).at[:n, 0].set(x.astype(jnp.float32))
    w2d = jnp.zeros((1, h_pad), jnp.float32).at[0, :h].set(W.astype(jnp.float32))

    grid = (n_pad // tile_n,)
    out = pl.pallas_call(
        _gfp_kernel,
        out_shape=jax.ShapeDtypeStruct((n_pad, 2 * h_pad), out_dtype),
        grid_spec=pl.GridSpec(
            grid=grid,
            in_specs=[
                pl.BlockSpec((tile_n, 1), lambda i: (i, 0)),
                pl.BlockSpec((1, h_pad), lambda i: (0, 0)),
            ],
            out_specs=pl.BlockSpec((tile_n, 2 * h_pad), lambda i: (i, 0)),
        ),
        compiler_params=pltpu.CompilerParams(
            dimension_semantics=("parallel",),
        ),
    )(x2d, w2d)

    if h_pad == h and n_pad == n:
        return out
    # Strip padding: sin half lives in [0, h), cos half in [h_pad, h_pad + h).
    sin_part = out[:n, :h]
    cos_part = out[:n, h_pad:h_pad + h]
    return jnp.concatenate([sin_part, cos_part], axis=-1)


def reference(x, W):
    x_proj = x[:, None].astype(jnp.float32) * W[None, :].astype(jnp.float32) * 2.0 * jnp.pi
    return jnp.concatenate([jnp.sin(x_proj), jnp.cos(x_proj)], axis=-1)


if __name__ == "__main__":
    key = jax.random.PRNGKey(0)
    k_w, k_x, k_w2, k_x2 = jax.random.split(key, 4)

    # Case 1: module defaults (embedding_size=256 -> H=128, lane-aligned), batch=8.
    embedding_size = 256
    scale = 1.0
    batch = 8
    W = jax.random.normal(k_w, (embedding_size // 2,), dtype=jnp.float32) * scale
    x = jax.random.normal(k_x, (batch,), dtype=jnp.float32)

    emb = jax.block_until_ready(gaussian_fourier_projection(x, W))
    ref = reference(x, W)
    assert emb.shape == (batch, embedding_size), emb.shape
    assert jnp.allclose(emb, ref, atol=1e-5, rtol=1e-5), "mismatch vs reference (aligned case)"

    # Case 2: unaligned embedding_size / ragged batch exercises the padding path.
    embedding_size2 = 100   # H = 50, not a multiple of 128
    batch2 = 11             # not a multiple of 8
    W2 = jax.random.normal(k_w2, (embedding_size2 // 2,), dtype=jnp.float32) * 0.5
    x2 = jax.random.normal(k_x2, (batch2,), dtype=jnp.float32)

    emb2 = jax.block_until_ready(gaussian_fourier_projection(x2, W2))
    ref2 = reference(x2, W2)
    assert emb2.shape == (batch2, 2 * (embedding_size2 // 2)), emb2.shape
    assert jnp.allclose(emb2, ref2, atol=1e-5, rtol=1e-5), "mismatch vs reference (padded case)"

    print("KERNEL_OK")
</pallas_src>

<mosaic_0001>
module attributes {stable_mosaic.version = 11 : i64} {
  func.func @_gfp_kernel(%arg0: i32, %arg1: memref<8x1xf32, #tpu.memory_space<vmem>>, %arg2: memref<1x128xf32, #tpu.memory_space<vmem>>, %arg3: memref<8x256xf32, #tpu.memory_space<vmem>>) attributes {dimension_semantics = [#tpu.dimension_semantics<parallel>], iteration_bounds = array<i64: 1>, scalar_prefetch = 0 : i64, scratch_operands = 0 : i64, tpu.core_type = #tpu.core_type<tc>, window_params = [{transform_indices = @transform_0, window_bounds = array<i64: 8, 1>}, {pipeline_mode = #tpu.pipeline_mode<synchronous>, transform_indices = @transform_1, window_bounds = array<i64: 1, 128>}, {transform_indices = @transform_2, window_bounds = array<i64: 8, 256>}]} {
    %c0 = arith.constant 0 : index
    %c0_0 = arith.constant 0 : index
    %0 = vector.load %arg2[%c0, %c0_0] : memref<1x128xf32, #tpu.memory_space<vmem>>, vector<1x128xf32>
    %cst = arith.constant 6.28318548 : f32
    %1 = vector.broadcast %cst : f32 to vector<1x128xf32>
    %2 = arith.mulf %0, %1 : vector<1x128xf32>
    %c0_1 = arith.constant 0 : index
    %c0_2 = arith.constant 0 : index
    %3 = vector.load %arg1[%c0_1, %c0_2] : memref<8x1xf32, #tpu.memory_space<vmem>>, vector<8x1xf32>
    %4 = vector.broadcast %3 : vector<8x1xf32> to vector<8x128xf32>
    %5 = vector.broadcast %2 : vector<1x128xf32> to vector<8x128xf32>
    %6 = arith.mulf %4, %5 : vector<8x128xf32>
    %7 = math.sin %6 : vector<8x128xf32>
    %c0_3 = arith.constant 0 : index
    %c0_4 = arith.constant 0 : index
    %8 = vector.load %arg3[%c0_3, %c0_4] : memref<8x256xf32, #tpu.memory_space<vmem>>, vector<8x128xf32>
    tpu.vector_store %arg3[%c0_3, %c0_4], %7 {strides = array<i32>} : memref<8x256xf32, #tpu.memory_space<vmem>>, vector<8x128xf32>,
    %9 = math.cos %6 : vector<8x128xf32>
    %c0_5 = arith.constant 0 : index
    %c128 = arith.constant 128 : index
    %10 = vector.load %arg3[%c0_5, %c128] : memref<8x256xf32, #tpu.memory_space<vmem>>, vector<8x128xf32>
    tpu.vector_store %arg3[%c0_5, %c128], %9 {strides = array<i32>} : memref<8x256xf32, #tpu.memory_space<vmem>>, vector<8x128xf32>,
    return
  }
  func.func @transform_0(%arg0: i32) -> (i32, i32) {
    %c0_i32 = arith.constant 0 : i32
    %c0_i32_0 = arith.constant 0 : i32
    return %arg0, %c0_i32 : i32, i32
  }
  func.func @transform_1(%arg0: i32) -> (i32, i32) {
    %c0_i32 = arith.constant 0 : i32
    %c0_i32_0 = arith.constant 0 : i32
    %c0_i32_1 = arith.constant 0 : i32
    return %c0_i32, %c0_i32_0 : i32, i32
  }
  func.func @transform_2(%arg0: i32) -> (i32, i32) {
    %c0_i32 = arith.constant 0 : i32
    %c0_i32_0 = arith.constant 0 : i32
    return %arg0, %c0_i32 : i32, i32
  }
}

</mosaic_0001>

<bundles_post_ra>
// kernel: tpu_custom_call.1
= control target key start
LH: loop header
LB: loop body
LE: loop exit
PB: predicated region body
PF: predicated region fallthrough
CT: control target
= control target key end

     0   :  { %v297_v1 = vmov 0   ;;  %s350_s0 = inlined_call_operand.vmem [shape: f32[8,1], index: 0, kind: input, shape index: {}]   ;;  %s351_s1 = inlined_call_operand.vmem [shape: f32[1,128], index: 1, kind: input, shape index: {}]   ;;  %s352_s2 = inlined_call_operand.hbm [shape: f32[8,256], index: 2, kind: output, shape index: {}]  }
   0x1   :  { %v14_v0 = vld [vmem:[%s350_s0] sm:$0xff]  ;;  %270 = vset.pattern.permute.xlu0 %v297_v1 }
   0x2   :  { %17 = vperm.xlu0 %270, %v14_v0  }
   0x3   :  { %7 = vsyncpa [#allocation3], 0  ;;  %v21_v2 = vlaneseq  ;;  %v12_v4 = vld [vmem:[%s351_s1] sm:$0x1]  ;;  %v298_v20 = vmov 683565275  }
   0x4   :  { %v13_v6 = vmul.f32 6.2831855, %v12_v4  ;;  %v299_v22 = vmov 2475754826   ;;  %v300_v25 = vmov 2131351028  }
   0x5   :  { %v22_v3 = vshrl.u32 %v21_v2, 7  ;;  %v301_v28 = vmov 2102212464   ;;  %v302_v31 = vmov 920167782   ;;  %s304_s0 = smov [#allocation2]  }
   0x6   :  { %v303_v34 = vmov 1326507024   ;;  %s242_s1 = sshll.u32 %s304_s0, 4  ;;  %s243_s1 = int_to_ptr.vmem [resolvable:$true] %s242_s1 }
   0x7   :  { %v23_v5 = vsub.s32 0, %v22_v3  ;;  %s275_s13 = scalar_lea.vmem %s243_s1, 256  ;;  %p280_p1 = scmp.lt.s32.totalorder %s243_s1, %s243_s1 }
   0x8   :  { %p276_p0 = scmp.ne.s32.totalorder %s243_s1, %s275_s13  ;;  %p281_p2 = scmp.lt.s32.totalorder %s275_s13, %s275_s13 }
   0x9   :  { %v24_v7 = vrot.slane %v13_v6, %v23_v5 }
   0xa   :  { %p282_p3 = por %p281_p2, %p280_p1 }
   0xc   :  { %p283_p4 = pnand %p282_p3, %p276_p0 }
  0x7d   :  { %v18_v8 = vpop.permute.xlu0 %17 }
  0x7e   :  { %v326_v9 = vmul.f32 %v24_v7, %v18_v8 }
  0x80   :  { %v30_v10 = vand.u32 2139095040, %v326_v9  ;;  %v27_v14 = vand.u32 2147483647, %v326_v9  ;;  %vm29_vm7 = vcmp.lt.s32.totalorder %v326_v9, 0  ;;  %vm119_vm15 = vweird.f32 %v326_v9 }
  0x82   :  { %v31_v11 = vshrl.u32 %v30_v10, 23  ;;  %v34_v17 = vand.u32 8388607, %v27_v14  ;;  %vm28_vm8 = vcmp.le.f32.partialorder %v27_v14, 0.7853982 }
  0x84   :  { %v250_v12 = vadd.s32 4294967169, %v31_v11  ;;  %v35_v36 = vor.u32 8388608, %v34_v17 }
  0x86   :  { %v37_v13 = vadd.s32 1, %v250_v12  ;;  %v75_v50 = vshll.u32 %v35_v36, 8 }
  0x88   :  { %vm38_vm0 = vcmp.gt.s32.totalorder %v37_v13, 0 }
  0x89   :  { %v39_v15 = vsel %vm38_vm0, %v37_v13, 0 }
  0x8a   :  { %v41_v16 = vand.u32 31, %v39_v15  ;;  %v40_v19 = vshrl.u32 %v39_v15, 5 }
  0x8c   :  { %v42_v18 = vsub.s32 32, %v41_v16  ;;  %v44_v21 = vshll.u32 %v298_v20, %v41_v16  ;;  %v47_v23 = vshll.u32 %v299_v22, %v41_v16  ;;  %v50_v27 = vshll.u32 %v300_v25, %v41_v16 }
  0x8d   :  { %v53_v30 = vshll.u32 %v301_v28, %v41_v16  ;;  %v56_v33 = vshll.u32 %v302_v31, %v41_v16  ;;  %vm59_vm1 = vcmp.lt.s32.totalorder %v40_v19, 1  ;;  %vm62_vm2 = vcmp.lt.s32.totalorder %v40_v19, 4 }
  0x8e   :  { %v45_v24 = vshrl.u32 %v299_v22, %v42_v18  ;;  %v48_v26 = vshrl.u32 %v300_v25, %v42_v18  ;;  %v51_v29 = vshrl.u32 %v301_v28, %v42_v18  ;;  %v54_v32 = vshrl.u32 %v302_v31, %v42_v18 }
  0x8f   :  { %v57_v35 = vshrl.u32 %v303_v34, %v42_v18  ;;  %v43_v45 = vshrl.u32 %v298_v20, %v42_v18  ;;  %vm61_vm3 = vcmp.lt.s32.totalorder %v40_v19, 3  ;;  %vm60_vm4 = vcmp.lt.s32.totalorder %v40_v19, 2 }
  0x90   :  { %v46_v37 = vor.u32 %v45_v24, %v44_v21  ;;  %v49_v38 = vor.u32 %v48_v26, %v47_v23  ;;  %v52_v39 = vor.u32 %v51_v29, %v50_v27  ;;  %v55_v40 = vor.u32 %v54_v32, %v53_v30 }
  0x91   :  { %v58_v41 = vor.u32 %v57_v35, %v56_v33 }
  0x92   :  { %v64_v42 = vsel %vm62_vm2, %v52_v39, 2102212464  ;;  %v67_v43 = vsel %vm59_vm1, %v46_v37, %v49_v38  ;;  %v71_v44 = vsel %vm59_vm1, %v49_v38, %v52_v39  ;;  %v68_v46 = vsel %vm62_vm2, %v55_v40, 920167782 }
  0x93   :  { %v72_v47 = vsel %vm62_vm2, %v58_v41, 1326507024  ;;  %v69_v48 = vsel %vm61_vm3, %v52_v39, %v68_v46  ;;  %v63_v51 = vsel %vm59_vm1, %v43_v45, %v46_v37  ;;  %v65_v52 = vsel %vm61_vm3, %v49_v38, %v64_v42 }
  0x94   :  { %v73_v49 = vsel %vm61_vm3, %v55_v40, %v72_v47  ;;  %v70_v53 = vsel %vm60_vm4, %v67_v43, %v69_v48  ;;  %v66_v59 = vsel %vm60_vm4, %v63_v51, %v65_v52 }
  0x95   :  { %v74_v54 = vsel %vm60_vm4, %v71_v44, %v73_v49  ;;  %v335_v57 = vmul.u32.u64.low %v75_v50, %v70_v53  ;;  %v336_v58 = vmul.u32.u64.high %v75_v50, %v70_v53, %v335_v57  ;;  %v82_v61 = vmul.u32 %v75_v50, %v66_v59 }
  0x96   :  { %v332_v55 = vmul.u32.u64.low %v75_v50, %v74_v54  ;;  %v333_v56 = vmul.u32.u64.high %v75_v50, %v74_v54, %v332_v55 }
  0x97   :  { %v85_v60 = vadd.s32 1, %v336_v58 }
  0x98   :  { %vm84_vm5 = vc.u32 %v333_v56, %v335_v57  ;;  %v83_v10 = vadd.s32 %v335_v57, %v333_v56 }
  0x99   :  { %v86_v62 = vsel %vm84_vm5, %v85_v60, %v336_v58 }
  0x9a   :  { %v87_v63 = vadd.s32 %v86_v62, %v82_v61 }
  0x9c   :  { %v88_v0 = vadd.s32 536870912, %v87_v63 }
  0x9e   :  { %v89_v1 = vshrl.u32 %v88_v0, 30 }
  0xa0   :  { %v90_v2 = vshll.u32 %v89_v1, 30  ;;  %v113_v24 = vsub.s32 4, %v89_v1 }
  0xa2   :  { %v91_v3 = vsub.s32 %v87_v63, %v90_v2  ;;  %v114_v27 = vsel %vm29_vm7, %v113_v24, %v89_v1 }
  0xa3   :  { %v116_v28 = vsel %vm28_vm8, 0, %v114_v27 }
  0xa4   :  { %v93_v4 = vsub.s32 0, %v91_v3  ;;  %v120_v29 = vadd.s32 3, %v116_v28  ;;  %v225_v31 = vand.u32 3, %v116_v28 }
  0xa6   :  { %v251_v5 = vmin.u32 %v93_v4, %v91_v3  ;;  %v121_v30 = vand.u32 3, %v120_v29  ;;  %vm230_vm10 = vcmp.eq.s32.totalorder %v225_v31, 2  ;;  %vm227_vm12 = vcmp.eq.s32.totalorder %v225_v31, 0 }
  0xa7   :  { %vm226_vm14 = vcmp.lt.s32.totalorder %v225_v31, 2 }
  0xa8   :  { %v95_v6 = vclz %v251_v5  ;;  %vm126_vm9 = vcmp.eq.s32.totalorder %v121_v30, 2  ;;  %vm123_vm11 = vcmp.eq.s32.totalorder %v121_v30, 0  ;;  %vm122_vm13 = vcmp.lt.s32.totalorder %v121_v30, 2 }
  0xaa   :  { %v252_v7 = vadd.s32 4294967294, %v95_v6 }
  0xac   :  { %vm253_vm6 = vcmp.lt.s32.totalorder %v252_v7, 0 }
  0xad   :  { %v98_v8 = vsel %vm253_vm6, 0, %v252_v7 }
  0xae   :  { %v99_v11 = vsub.s32 32, %v98_v8  ;;  %v103_v12 = vsub.s32 4294967266, %v98_v8  ;;  %v100_v13 = vshll.u32 %v91_v3, %v98_v8 }
  0xb0   :  { %v101_v15 = vshrl.u32 %v83_v10, %v99_v11  ;;  %v104_v16 = vadd.s32 127, %v103_v12 }
  0xb2   :  { %v102_v17 = vor.u32 %v101_v15, %v100_v13  ;;  %v105_v18 = vshll.u32 %v104_v16, 23 }
  0xb4   :  { %v106_v19 = vor.u32 4788187, %v105_v18  ;;  %v109_v21 = vcvt.s32.f32 %v102_v17 }
  0xb6   :  { %v107_v20 = vand.u32 2147483647, %v106_v19 }
  0xb8   :  { %v110_v22 = vmul.f32 %v109_v21, %v107_v20 }
  0xba   :  { %v111_v23 = vxor.u32 2147483648, %v110_v22 }
  0xbc   :  { %v112_v25 = vsel %vm29_vm7, %v111_v23, %v110_v22 }
  0xbd   :  { %v115_v26 = vsel %vm28_vm8, %v326_v9, %v112_v25 }
  0xbe   :  { %271 = vcosq.f32 %v115_v26 }
  0xbf   :  { %273 = vsinq.f32 %v115_v26 }
  0xcb   :  { %v272_v32 = vpop.eup %271 }
  0xcc   :  { %v274_v33 = vpop.eup %273  ;;  %v127_v34 = vxor.u32 2147483648, %v272_v32 }
  0xcd   :  { %v124_v35 = vxor.u32 2147483648, %v274_v33 }
  0xce   :  { %v128_v14 = vsel %vm126_vm9, %v127_v34, %v274_v33  ;;  %v232_v36 = vsel %vm230_vm10, %v127_v34, %v274_v33 }
  0xcf   :  { %v125_v37 = vsel %vm123_vm11, %v272_v32, %v124_v35  ;;  %v229_v38 = vsel %vm227_vm12, %v272_v32, %v124_v35 }
  0xd0   :  { %v129_v39 = vsel %vm122_vm13, %v125_v37, %v128_v14  ;;  %v233_v40 = vsel %vm226_vm14, %v229_v38, %v232_v36 }
  0xd1   :  { %v130_v41 = vsel %vm119_vm15, nan, %v129_v39  ;;  %v234_v42 = vsel %vm119_vm15, nan, %v233_v40 }
  0xd2   :  { %131 = vst [vmem:[#allocation2] sm:$0xff] %v130_v41  ;;  %235 = vst [vmem:[#allocation2 + $0x8] sm:$0xff] %v234_v42 }
  0xd3   :  { %286 = shalt.err (!%p283_p4)
}
  0xd4   :  { %245 = dma.vmem_to_hbm [thread:$0]  %s243_s1, 256, %s352_s2, [#allocation3]  }
  0xd5   :  { %295 = dma.done.wait [#allocation3], 256  }
  0xd6   :  { %296 = vsyncadd [#allocation3], 4294967040 }
  0xd7   :  { %249 = vsyncpa [#allocation3], 1 }

</bundles_post_ra>
